<compile_context>
chip_gen: v7x
topology: tpu7x:2x2x1
jax: 0.10.0
libtpu: 0.0.40
codegen_flags: <defaults>
</compile_context>

<pallas_src>
import jax
import jax.numpy as jnp
from jax import lax
from jax.experimental import pallas as pl
from jax.experimental.pallas import tpu as pltpu


def _round_up(x: int, m: int) -> int:
    return ((x + m - 1) // m) * m


def _vmem_capacity_bytes() -> int:
    """Per-core VMEM capacity; conservative (v7x, 64 MiB) fallback."""
    try:
        cap = getattr(pltpu.get_tpu_info(), "vmem_capacity_bytes", None)
        if cap:
            return int(cap)
    except Exception:
        pass
    return 64 * 2**20


def _plan_axis(size: int, align: int, max_tile: int) -> tuple[int, int]:
    """Return (padded_size, tile).

    Prefers a tile (multiple of `align`, <= max_tile) that divides the
    align-padded size exactly -- no extra wrapper padding and no dead tiles.
    Falls back to heavier padding only when the exact divisors are degenerate.
    """
    max_tile = max(align, (max_tile // align) * align)
    padded = _round_up(size, align)
    if padded <= max_tile:
        return padded, padded
    lo = max(align, (max_tile // 4 // align) * align)
    t = max_tile
    while t >= lo:
        if padded % t == 0:
            return padded, t
        t -= align
    return _round_up(size, max_tile), max_tile


def _dot_kernel_inplace(q_ref, k_ref, o_ref):
    """Accumulate directly into the VMEM-resident output block.

    Valid when the K grid axis has one step, or when o_ref is float32
    (accumulator precision == output precision)."""
    kk = pl.program_id(3)
    # q @ k^T without materializing a transpose: contract dim 1 of both operands.
    part = lax.dot_general(
        q_ref[...],
        k_ref[...],
        dimension_numbers=(((1,), (1,)), ((), ())),
        preferred_element_type=jnp.float32,
    )

    @pl.when(kk == 0)
    def _first():
        o_ref[...] = part.astype(o_ref.dtype)

    @pl.when(kk > 0)
    def _accumulate():
        o_ref[...] += part.astype(o_ref.dtype)


def _dot_kernel_acc(q_ref, k_ref, o_ref, acc_ref):
    """Split-K with a narrow output dtype: accumulate in an f32 scratch."""
    kk = pl.program_id(3)
    part = lax.dot_general(
        q_ref[...],
        k_ref[...],
        dimension_numbers=(((1,), (1,)), ((), ())),
        preferred_element_type=jnp.float32,
    )

    @pl.when(kk == 0)
    def _first():
        acc_ref[...] = part

    @pl.when(kk > 0)
    def _accumulate():
        acc_ref[...] += part

    @pl.when(kk == pl.num_programs(3) - 1)
    def _finalize():
        o_ref[...] = acc_ref[...].astype(o_ref.dtype)


def dot_product(
    queries: jax.Array,
    keys: jax.Array,
    *,
    max_tn: int = 512,   # max N tile (sublane axis of output)
    max_tm: int = 512,   # max M tile (lane axis of output)
    max_tk: int | None = None,  # None -> full (128-padded) contraction if it fits
) -> jax.Array:
    """Pallas equivalent of torch.bmm(queries, keys.transpose(1, 2))."""
    assert queries.ndim == 3 and keys.ndim == 3
    B, N, D = queries.shape
    Bk, M, Dk = keys.shape
    assert B == Bk and D == Dk, "batch / feature dims must match"

    out_dtype = jnp.result_type(queries.dtype, keys.dtype)
    q = queries.astype(out_dtype)
    k = keys.astype(out_dtype)

    in_itemsize = jnp.dtype(out_dtype).itemsize
    out_itemsize = in_itemsize
    # Keep output sublanes densely packed: f32 -> 8, bf16 -> 16, 8-bit -> 32.
    sublane = max(8, 32 // out_itemsize)

    Np, tn = _plan_axis(N, sublane, max_tn)
    Mp, tm = _plan_axis(M, 128, max_tm)   # lane axis of output: 128-aligned
    Dp = _round_up(D, 128)

    vmem_cap = _vmem_capacity_bytes()
    fit_budget = vmem_cap // 2            # leave half of VMEM for Mosaic scratch

    def vmem_need(tk_: int) -> int:
        # double-buffered input tiles + double-buffered output + f32 accumulator
        return (2 * (tn + tm) * tk_ * in_itemsize
                + 2 * tn * tm * out_itemsize
                + tn * tm * 4)

    # Prefer the full contraction (one K step); only split K when VMEM forces it.
    max_tk_eff = Dp if max_tk is None else max(128, min(_round_up(max_tk, 128), Dp))
    n128 = Dp // 128
    tk = 128
    for d in sorted((d for d in range(1, n128 + 1) if n128 % d == 0), reverse=True):
        cand = 128 * d
        if cand <= max_tk_eff and vmem_need(cand) <= fit_budget:
            tk = cand
            break

    # Zero-padding is exact for a matmul; padded rows/cols are sliced off below.
    if (Np, Dp) != (N, D):
        q = jnp.pad(q, ((0, 0), (0, Np - N), (0, Dp - D)))
    if (Mp, Dp) != (M, D):
        k = jnp.pad(k, ((0, 0), (0, Mp - M), (0, Dp - D)))

    grid_n, grid_m, grid_k = Np // tn, Mp // tm, Dp // tk
    grid = (B, grid_n, grid_m, grid_k)

    # Only split-K with a narrow output dtype needs a separate f32 accumulator.
    use_acc = (grid_k > 1) and (out_dtype != jnp.float32)
    kernel = _dot_kernel_acc if use_acc else _dot_kernel_inplace
    scratch = [pltpu.VMEM((tn, tm), jnp.float32)] if use_acc else []

    need = vmem_need(tk)
    vmem_limit = int(min(int(0.75 * vmem_cap), max(32 * 2**20, 2 * need)))

    cost = pl.CostEstimate(
        flops=2 * B * Np * Mp * Dp,
        transcendentals=0,
        bytes_accessed=(
            grid_m * B * Np * Dp * in_itemsize     # Q re-streamed once per M tile
            + grid_n * B * Mp * Dp * in_itemsize   # K re-streamed once per N tile
            + B * Np * Mp * out_itemsize
        ),
    )

    out = pl.pallas_call(
        kernel,
        out_shape=jax.ShapeDtypeStruct((B, Np, Mp), out_dtype),
        grid_spec=pltpu.PrefetchScalarGridSpec(
            num_scalar_prefetch=0,
            grid=grid,
            in_specs=[
                pl.BlockSpec((pl.Squeezed(), tn, tk), lambda b, i, j, kk: (b, i, kk)),
                pl.BlockSpec((pl.Squeezed(), tm, tk), lambda b, i, j, kk: (b, j, kk)),
            ],
            out_specs=pl.BlockSpec(
                (pl.Squeezed(), tn, tm), lambda b, i, j, kk: (b, i, j)
            ),
            scratch_shapes=scratch,
        ),
        compiler_params=pltpu.CompilerParams(
            dimension_semantics=("parallel", "parallel", "parallel", "arbitrary"),
            vmem_limit_bytes=vmem_limit,
        ),
        cost_estimate=cost,
    )(q, k)

    if (Np, Mp) != (N, M):
        out = out[:, :N, :M]
    return out


if __name__ == "__main__":
    key = jax.random.PRNGKey(0)
    key_q, key_k = jax.random.split(key)

    # Small shapes consistent with the module's forward (bmm of set features).
    B, N, M, D = 2, 8, 8, 32
    queries = jax.random.normal(key_q, (B, N, D), dtype=jnp.float32)
    keys = jax.random.normal(key_k, (B, M, D), dtype=jnp.float32)

    out = dot_product(queries, keys)
    jax.block_until_ready(out)

    ref = jnp.einsum("bnd,bmd->bnm", queries, keys)
    assert out.shape == (B, N, M)
    assert jnp.allclose(out, ref, atol=1e-5, rtol=1e-5)

    # Larger, tile-exercising shapes: default plan (full-D contraction, tiles
    # that divide 384 exactly -> zero padding) and an explicit split-K plan.
    B2, N2, M2, D2 = 2, 384, 384, 640
    q2 = jax.random.normal(key_q, (B2, N2, D2), dtype=jnp.float32)
    k2 = jax.random.normal(key_k, (B2, M2, D2), dtype=jnp.float32)

    out2 = dot_product(q2, k2)                                       # single K step
    out3 = dot_product(q2, k2, max_tn=128, max_tm=128, max_tk=128)   # split-K path
    jax.block_until_ready((out2, out3))

    ref2 = jnp.einsum("bnd,bmd->bnm", q2, k2)
    assert jnp.allclose(out2, ref2, atol=1e-3, rtol=1e-3)
    assert jnp.allclose(out3, ref2, atol=1e-3, rtol=1e-3)

    print("KERNEL_OK")
</pallas_src>

<mosaic_0001>
module attributes {stable_mosaic.version = 11 : i64} {
  func.func @_dot_kernel_inplace(%arg0: i32, %arg1: i32, %arg2: i32, %arg3: i32, %arg4: memref<1x8x128xf32, #tpu.memory_space<vmem>>, %arg5: memref<1x128x128xf32, #tpu.memory_space<vmem>>, %arg6: memref<1x8x128xf32, #tpu.memory_space<vmem>>) attributes {dimension_semantics = [#tpu.dimension_semantics<parallel>, #tpu.dimension_semantics<parallel>, #tpu.dimension_semantics<parallel>, #tpu.dimension_semantics<arbitrary>], iteration_bounds = array<i64: 2, 1, 1, 1>, scalar_prefetch = 0 : i64, scratch_operands = 0 : i64, tpu.core_type = #tpu.core_type<tc>, window_params = [{transform_indices = @transform_0, window_bounds = array<i64: 1, 8, 128>}, {transform_indices = @transform_1, window_bounds = array<i64: 1, 128, 128>}, {transform_indices = @transform_2, window_bounds = array<i64: 1, 8, 128>}]} {
    %c0 = arith.constant 0 : index
    %c0_0 = arith.constant 0 : index
    %c0_1 = arith.constant 0 : index
    %0 = vector.load %arg4[%c0, %c0_0, %c0_1] : memref<1x8x128xf32, #tpu.memory_space<vmem>>, vector<1x8x128xf32>
    %1 = vector.shape_cast %0 : vector<1x8x128xf32> to vector<8x128xf32>
    %c0_2 = arith.constant 0 : index
    %c0_3 = arith.constant 0 : index
    %c0_4 = arith.constant 0 : index
    %2 = vector.load %arg5[%c0_2, %c0_3, %c0_4] : memref<1x128x128xf32, #tpu.memory_space<vmem>>, vector<1x128x128xf32>
    %3 = vector.shape_cast %2 : vector<1x128x128xf32> to vector<128x128xf32>
    %cst = arith.constant dense<0.000000e+00> : vector<8x128xf32>
    %4 = tpu.matmul %1, %3, %cst {dimension_numbers = #tpu.dot_dimension_numbers<[1], [1], [0], [0], [0, 0, 1, 0], [], []>} : vector<8x128xf32>, vector<128x128xf32>, vector<8x128xf32> -> vector<8x128xf32>
    %c0_i32 = arith.constant 0 : i32
    %5 = arith.cmpi eq, %arg3, %c0_i32 : i32
    %6 = arith.extui %5 : i1 to i32
    %c0_i32_5 = arith.constant 0 : i32
    %7 = arith.cmpi ne, %6, %c0_i32_5 : i32
    scf.if %7 {
      %c0_8 = arith.constant 0 : index
      %c0_9 = arith.constant 0 : index
      %c0_10 = arith.constant 0 : index
      %11 = vector.load %arg6[%c0_8, %c0_9, %c0_10] : memref<1x8x128xf32, #tpu.memory_space<vmem>>, vector<1x8x128xf32>
      %12 = vector.shape_cast %11 : vector<1x8x128xf32> to vector<8x128xf32>
      %13 = vector.shape_cast %4 : vector<8x128xf32> to vector<1x8x128xf32>
      tpu.vector_store %arg6[%c0_8, %c0_9, %c0_10], %13 {strides = array<i32>} : memref<1x8x128xf32, #tpu.memory_space<vmem>>, vector<1x8x128xf32>,
    } else {
    }
    %c0_i32_6 = arith.constant 0 : i32
    %8 = arith.cmpi sgt, %arg3, %c0_i32_6 : i32
    %9 = arith.extui %8 : i1 to i32
    %c0_i32_7 = arith.constant 0 : i32
    %10 = arith.cmpi ne, %9, %c0_i32_7 : i32
    scf.if %10 {
      %c0_8 = arith.constant 0 : index
      %c0_9 = arith.constant 0 : index
      %c0_10 = arith.constant 0 : index
      %11 = vector.load %arg6[%c0_8, %c0_9, %c0_10] : memref<1x8x128xf32, #tpu.memory_space<vmem>>, vector<1x8x128xf32>
      %12 = vector.shape_cast %11 : vector<1x8x128xf32> to vector<8x128xf32>
      %13 = arith.addf %12, %4 : vector<8x128xf32>
      %c0_11 = arith.constant 0 : index
      %c0_12 = arith.constant 0 : index
      %c0_13 = arith.constant 0 : index
      %14 = vector.load %arg6[%c0_11, %c0_12, %c0_13] : memref<1x8x128xf32, #tpu.memory_space<vmem>>, vector<1x8x128xf32>
      %15 = vector.shape_cast %14 : vector<1x8x128xf32> to vector<8x128xf32>
      %16 = vector.shape_cast %13 : vector<8x128xf32> to vector<1x8x128xf32>
      tpu.vector_store %arg6[%c0_11, %c0_12, %c0_13], %16 {strides = array<i32>} : memref<1x8x128xf32, #tpu.memory_space<vmem>>, vector<1x8x128xf32>,
    } else {
    }
    return
  }
  func.func @transform_0(%arg0: i32, %arg1: i32, %arg2: i32, %arg3: i32) -> (i32, i32, i32) {
    %c0_i32 = arith.constant 0 : i32
    return %arg0, %arg1, %arg3 : i32, i32, i32
  }
  func.func @transform_1(%arg0: i32, %arg1: i32, %arg2: i32, %arg3: i32) -> (i32, i32, i32) {
    %c0_i32 = arith.constant 0 : i32
    return %arg0, %arg2, %arg3 : i32, i32, i32
  }
  func.func @transform_2(%arg0: i32, %arg1: i32, %arg2: i32, %arg3: i32) -> (i32, i32, i32) {
    %c0_i32 = arith.constant 0 : i32
    return %arg0, %arg1, %arg2 : i32, i32, i32
  }
}

</mosaic_0001>

<bundles_post_ra>
// kernel: tpu_custom_call.1
= control target key start
LH: loop header
LB: loop body
LE: loop exit
PB: predicated region body
PF: predicated region fallthrough
CT: control target
= control target key end

     0   :  { %7 = vsyncpa [#allocation3], 0  ;;  %s1058_s0 = inlined_call_operand.hbm [shape: f32[2,8,128], index: 0, kind: input, shape index: {}]   ;;  %s1059_s1 = inlined_call_operand.hbm [shape: f32[2,128,128], index: 1, kind: input, shape index: {}]   ;;  %s1060_s2 = inlined_call_operand.hbm [shape: f32[2,8,128], index: 2, kind: output, shape index: {}]  }
   0x1   :  { %9 = vsyncpa [#allocation3 + $0x1], 0 }
   0x2   :  { %10 = vsyncpa [#allocation6], 0 }
   0x3   :  { %12 = vsyncpa [#allocation6 + $0x1], 0 }
   0x4   :  { %13 = vsyncpa [#allocation4], 0 }
   0x5   :  { %15 = vsyncpa [#allocation4 + $0x1], 0  ;;  %s810_s9 = smov 0   ;;  %s812_s10 = smov 0  }
   0x6   :  { %s814_s11 = smov 0   ;;  %s816_s12 = smov 0  }
   0x7   :  { %s818_s13 = smov 0   ;;  %s820_s14 = smov 0  }
   0x8 LB: > { %s473_s15 = sadd.s32 4294967295, %s785_s14   ;;  %s474_s16 = sadd.s32 4294967294, %s785_s14   ;;  %s785_s14 = sphi %s820_s14, %s21_s14   ;;  %s781_s13 = sphi %s818_s13, %s1079_s13   ;;  %s777_s12 = sphi %s816_s12, %s1078_s12   ;;  %s773_s11 = sphi %s814_s11, %s1077_s11   ;;  %s769_s10 = sphi %s812_s10, %s1076_s10   ;;  %s765_s9 = sphi %s810_s9, %s1075_s9  }
   0x9   : > { %s47_s17 = sadd.s32 1, %s781_s13  ;;  %s58_s18 = sadd.s32 1, %s773_s11 }
   0xa   : > { %p49_p0 = scmp.ge.s32.totalorder %s47_s17, 2  ;;  %p65_p1 = scmp.ne.s32.totalorder %s773_s11, %s769_s10 }
   0xb   : > { %p66_p2 = scmp.eq.s32.totalorder %s785_s14, 0  ;;  %p71_p3 = scmp.ne.s32.totalorder %s769_s10, %s765_s9 }
   0xc   : > { %s1081_s17 = smov (%p49_p0, %s47_s17), 0  ;;  %p72_p5 = scmp.eq.s32.totalorder %s473_s15, 0 }
   0xd   : > { %p851_p4 = por %p66_p2, %p65_p1  ;;  %s51_s20 = ssub.s32 %s781_s13, %s1081_s17 }
   0xe   : > { %p129_p6 = scmp.eq.s32.totalorder %s473_s15, 1  ;;  %p56_p7 = scmp.eq.s32.totalorder %s51_s20, 0 }
   0xf   : > { %p857_p8 = por %p72_p5, %p71_p3  ;;  %p135_p10 = scmp.eq.s32.totalorder %s474_s16, 1 }
  0x10   : > { %p861_p9 = por %p129_p6, %p65_p1  ;;  %p584_p13 = scmp.lt.s32.totalorder %s785_s14, 2 }
  0x11   : > { %s1064_s21 = scalar_select %p857_p8, 1, 0 }
  0x12   : > { %s1065_s22 = scalar_select %p861_p9, 1, 0 }
  0x13   : > { %s866_s23 = scalar_select %p56_p7, %s773_s11, %s58_s18  }
  0x14   : > { %p868_p11 = por %p135_p10, %p71_p3  ;;  %s875_s25 = sand.u32 1, %s773_s11  }
  0x15   : > { %s477_s26 = sshll.u32 %s875_s25, 3  ;;  %s478_s27 = sshll.u32 %s781_s13, 7 }
  0x16   : > { %s1066_s24 = scalar_select %p868_p11, 1, 0 }
  0x17   : > { %s882_s30 = scalar_lea.hbm %s1058_s0, %s478_s27  ;;  %s159_s3 = scalar_lea.vmem [#allocation2], %s477_s26 }
  0x18   : > { %s168_s4 = sshll.u32 %s159_s3, 4  ;;  %p888_p0 = pnand %p584_p13, %p851_p4  ;;  %s884_s4 = int_to_ptr.vmem [resolvable:$true] %s168_s4 }
  0x19   : > { %s156_s6 = scalar_lea.sflag [#allocation3], %s875_s25  ;;  %s639_s7 = scalar_lea.hbm %s882_s30, 128 }
  0x1a   : > { %p640_p3 = scmp.ne.s32.totalorder %s882_s30, %s639_s7  ;;  %p641_p5 = pneg %p888_p0 }
  0x1b   : > { %s644_s16 = scalar_lea.hbm %s1058_s0, 256  ;;  %p645_p4 = scmp.lt.u32.totalorder %s882_s30, %s1058_s0 }
  0x1c   : > { %p642_p6 = pnand %p641_p5, %p640_p3  ;;  %p646_p10 = scmp.lt.u32.totalorder %s644_s16, %s639_s7 }
  0x1d   : > { %p648_p12 = scmp.lt.u32.totalorder %s639_s7, %s882_s30 }
  0x1e   : > { %p643_p7 = pneg %p642_p6  ;;  %p647_p13 = por %p646_p10, %p645_p4 }
  0x20   : > { %p649_p1 = por %p648_p12, %p647_p13 }
  0x22   : > { %p650_p2 = pnand %p649_p1, %p643_p7 }
  0x24   : > { %653 = shalt.err (!%p650_p2)
}
  0x25   : > { %s654_s20 = scalar_lea.vmem %s884_s4, 128  ;;  %s787_s26 = smov [#allocation2]  }
  0x26   : > { %p655_p3 = scmp.ne.s32.totalorder %s884_s4, %s654_s20  ;;  %s659_s27 = sshll.u32 %s787_s26, 4  ;;  %s660_s27 = int_to_ptr.vmem [resolvable:$false] %s659_s27 }
  0x27   : > { %s661_s28 = scalar_lea.vmem %s660_s27, 256  ;;  %p662_p9 = scmp.lt.s32.totalorder %s884_s4, %s660_s27 }
  0x28   : > { %p657_p6 = pnand %p655_p3, %p641_p5  ;;  %p663_p4 = scmp.lt.s32.totalorder %s661_s28, %s654_s20 }
  0x2a   : > { %p658_p11 = pneg %p657_p6  ;;  %p664_p10 = por %p663_p4, %p662_p9 }
  0x2c   : > { %p665_p12 = pnand %p664_p10, %p658_p11 }
  0x2e   : > { %668 = shalt.err (!%p665_p12)
}
  0x2f   : > { %576 = dma.hbm_to_vmem [thread:$0]  (!%p888_p0), %s882_s30, 128, %s884_s4, %s156_s6  }
  0x30   : > { %p1068_p1 = scmp.lt.s32.totalorder %s785_s14, 3  ;;  %p1069_p2 = scmp.ge.s32.totalorder %s785_s14, 1 }
  0x31   : > { %s479_s3 = sshll.u32 %s875_s25, 7  ;;  %s490_s7 = sshll.u32 %s781_s13, 11 }
  0x32   : > { %p924_p7 = pnand %p1069_p2, %p1068_p1  ;;  %s933_s16 = scalar_lea.hbm %s1059_s1, %s490_s7 }
  0x33   : > { %s179_s18 = scalar_lea.vmem [#allocation5], %s479_s3  ;;  %s176_s30 = scalar_lea.sflag [#allocation6], %s875_s25 }
  0x34   : > { %s189_s19 = sshll.u32 %s179_s18, 4  ;;  %s669_s4 = scalar_lea.hbm %s933_s16, 2048  ;;  %s935_s19 = int_to_ptr.vmem [resolvable:$true] %s189_s19 }
  0x35   : > { %p670_p9 = scmp.ne.s32.totalorder %s933_s16, %s669_s4  ;;  %s674_s26 = scalar_lea.hbm %s1059_s1, 4096 }
  0x36   : > { %p675_p3 = scmp.lt.u32.totalorder %s933_s16, %s1059_s1  ;;  %p676_p6 = scmp.lt.u32.totalorder %s674_s26, %s669_s4 }
  0x37   : > { %p672_p11 = pnand %p670_p9, %p641_p5  ;;  %p678_p10 = scmp.lt.u32.totalorder %s669_s4, %s933_s16 }
  0x38   : > { %p677_p4 = por %p676_p6, %p675_p3 }
  0x39   : > { %p673_p13 = pneg %p672_p11 }
  0x3a   : > { %p679_p12 = por %p678_p10, %p677_p4 }
  0x3c   : > { %p680_p1 = pnand %p679_p12, %p673_p13 }
  0x3e   : > { %683 = shalt.err (!%p680_p1)
}
  0x3f   : > { %s684_s3 = scalar_lea.vmem %s935_s19, 2048  ;;  %s788_s7 = smov [#allocation5]  }
  0x40   : > { %p685_p2 = scmp.ne.s32.totalorder %s935_s19, %s684_s3  ;;  %s689_s8 = sshll.u32 %s788_s7, 4  ;;  %s690_s8 = int_to_ptr.vmem [resolvable:$false] %s689_s8 }
  0x41   : > { %s691_s15 = scalar_lea.vmem %s690_s8, 4096  ;;  %p692_p8 = scmp.lt.s32.totalorder %s935_s19, %s690_s8 }
  0x42   : > { %p687_p9 = pnand %p685_p2, %p641_p5  ;;  %p693_p3 = scmp.lt.s32.totalorder %s691_s15, %s684_s3 }
  0x44   : > { %p688_p11 = pneg %p687_p9  ;;  %p694_p6 = por %p693_p3, %p692_p8 }
  0x46   : > { %p695_p4 = pnand %p694_p6, %p688_p11 }
  0x48   : > { %698 = shalt.err (!%p695_p4)
}
  0x49   : > { %s789_s18 = smov 128   ;;  %s790_s4 = smov 8  }
  0x4a   : > { %579 = dma.hbm_to_vmem [thread:$0]  (!%p888_p0), %s933_s16, 2048, %s935_s19, %s176_s30, %s789_s18, %s789_s18, %s790_s4  }
  0x4b   : > { %201 = sbr.rel (%p924_p7) target bundleno = 378 (0x17a), region = 28  ;;  %s966_s6 = sand.u32 (!%p924_p7), 1, %s769_s10  }
  0x4c   : > { %s483_s20 = sshll.u32 (!%p924_p7), %s966_s6, 3  ;;  %s204_s26 = scalar_lea.sflag (!%p924_p7), [#allocation3], %s966_s6 }
  0x4d   : > { %s972_s27 = scalar_lea.vmem (!%p924_p7), [#allocation2], %s483_s20  ;;  %p1071_p8 = scmp.ne.s32.totalorder (!%p924_p7), %s1064_s21, 0 }
  0x52   : > { %752 = dma.done.wait (%p1071_p8), %s204_s26, 128  }
  0x53   : > { %754 = vsyncadd (%p1071_p8), %s204_s26, 4294967168  ;;  %s484_s25 = sshll.u32 %s966_s6, 7  ;;  %s213_s5 = scalar_lea.sflag [#allocation6], %s966_s6 }
  0x54   : > { %s980_s29 = scalar_lea.vmem [#allocation5], %s484_s25 }
  0x55   : > { %756 = dma.done.wait (%p1071_p8), %s213_s5, 2048  }
  0x56   : > { %758 = vsyncadd (%p1071_p8), %s213_s5, 4294965248  ;;  %v791_v0 = vmov 0.0|0.0   ;;  %vm792_vm0 = vmmov 0   ;;  %v793_v1 = vmov 0.0   ;;  %v244_v2 = vld [vmem:[%s980_s29] sm:$0xff]  ;;  %v245_v3 = vld [vmem:[%s980_s29 + $0x8] sm:$0xff] }
  0x57   : > { %543 = vmatprep.subr.bf16.mxu0 %v791_v0  ;;  %540 = vmatprep.mubr.msk.f32.mxu0 %vm792_vm0, %v793_v1  ;;  %v544_v4 = vpack.c.bf16 %v245_v3, %v244_v2  ;;  %v246_v5 = vld [vmem:[%s980_s29 + $0x10] sm:$0xff]  ;;  %v247_v6 = vld [vmem:[%s980_s29 + $0x18] sm:$0xff]  ;;  %v248_v8 = vld [vmem:[%s980_s29 + $0x20] sm:$0xff]  ;;  %s241_s21 = scalar_lea.vmem [#allocation7], %s483_s20  ;;  %s487_s19 = sshll.u32 %s777_s12, 7 }
  0x58   : > { %v547_v7 = vpack.c.bf16 %v247_v6, %v246_v5  ;;  %v249_v9 = vld [vmem:[%s980_s29 + $0x28] sm:$0xff]  ;;  %v250_v11 = vld [vmem:[%s980_s29 + $0x30] sm:$0xff]  ;;  %v251_v12 = vld [vmem:[%s980_s29 + $0x38] sm:$0xff]  ;;  %s358_s16 = sshll.u32 %s241_s21, 4  ;;  %s1011_s3 = scalar_lea.hbm %s1060_s2, %s487_s19  ;;  %s1006_s16 = int_to_ptr.vmem [resolvable:$true] %s358_s16 }
  0x59   : > { %545 = vmatpush3.bf16.xpose.msra.mxu0 %v544_v4  ;;  %v550_v10 = vpack.c.bf16 %v249_v9, %v248_v8  ;;  %v553_v13 = vpack.c.bf16 %v251_v12, %v250_v11  ;;  %v252_v14 = vld [vmem:[%s980_s29 + $0x40] sm:$0xff]  ;;  %v253_v15 = vld [vmem:[%s980_s29 + $0x48] sm:$0xff]  ;;  %v254_v17 = vld [vmem:[%s980_s29 + $0x50] sm:$0xff]  ;;  %s343_s7 = scalar_lea.sflag [#allocation4], %s966_s6  ;;  %s699_s8 = scalar_lea.vmem %s1006_s16, 128 }
  0x5a   : > { %546 = vmatprep.subr.bf16.mxu0 %v791_v0  ;;  %v556_v16 = vpack.c.bf16 %v253_v15, %v252_v14  ;;  %v255_v18 = vld [vmem:[%s980_s29 + $0x58] sm:$0xff]  ;;  %v256_v20 = vld [vmem:[%s980_s29 + $0x60] sm:$0xff]  ;;  %v257_v21 = vld [vmem:[%s980_s29 + $0x68] sm:$0xff]  ;;  %p700_p0 = scmp.ne.s32.totalorder %s1006_s16, %s699_s8  ;;  %p1072_p5 = scmp.ne.s32.totalorder %s1065_s22, 0 }
  0x5b   : > { %v559_v19 = vpack.c.bf16 %v255_v18, %v254_v17  ;;  %v562_v22 = vpack.c.bf16 %v257_v21, %v256_v20  ;;  %v258_v23 = vld [vmem:[%s980_s29 + $0x70] sm:$0xff]  ;;  %v259_v24 = vld [vmem:[%s980_s29 + $0x78] sm:$0xff]  ;;  %s794_s12 = smov [#allocation7]  }
  0x5c   : > { %v565_v25 = vpack.c.bf16 %v259_v24, %v258_v23  ;;  %v243_v26 = vld [vmem:[%s972_s27] sm:$0xff]  ;;  %p701_p7 = pnand %p700_p0, %p1072_p5  ;;  %s703_s15 = sshll.u32 %s794_s12, 4  ;;  %s704_s15 = int_to_ptr.vmem [resolvable:$false] %s703_s15 }
  0x5d   : > { %s705_s18 = scalar_lea.vmem %s704_s15, 256  ;;  %p706_p10 = scmp.lt.s32.totalorder %s1006_s16, %s704_s15 }
  0x5e   : > { %p702_p13 = pneg %p701_p7  ;;  %p707_p12 = scmp.lt.s32.totalorder %s705_s18, %s699_s8 }
  0x60   : > { %p708_p1 = por %p707_p12, %p706_p10 }
  0x61   : > { %548 = vmatpush3.bf16.xpose.msra.mxu0 %v547_v7 }
  0x62   : > { %549 = vmatprep.subr.bf16.mxu0 %v791_v0  ;;  %p709_p2 = pnand %p708_p1, %p702_p13 }
  0x69   : > { %551 = vmatpush3.bf16.xpose.msra.mxu0 %v550_v10 }
  0x6a   : > { %552 = vmatprep.subr.bf16.mxu0 %v791_v0 }
  0x71   : > { %554 = vmatpush3.bf16.xpose.msra.mxu0 %v553_v13 }
  0x72   : > { %555 = vmatprep.subr.bf16.mxu0 %v791_v0 }
  0x79   : > { %557 = vmatpush3.bf16.xpose.msra.mxu0 %v556_v16 }
  0x7a   : > { %558 = vmatprep.subr.bf16.mxu0 %v791_v0 }
  0x81   : > { %560 = vmatpush3.bf16.xpose.msra.mxu0 %v559_v19 }
  0x82   : > { %561 = vmatprep.subr.bf16.mxu0 %v791_v0 }
  0x89   : > { %563 = vmatpush3.bf16.xpose.msra.mxu0 %v562_v22 }
  0x8a   : > { %564 = vmatprep.subr.bf16.mxu0 %v791_v0 }
  0x91   : > { %566 = vmatpush3.bf16.xpose.msra.mxu0 %v565_v25 }
  0x98   : > { %541 = vmatmul.mubr.f32.vlgmr.msra.gmra.mrb[0].mxu0 %v243_v26 }
 0x16b   : > { %v326_v27 = vpop.f32.mrb[0].mxu0 }
 0x16c   : > { %334 = vst [vmem:[%s241_s21] sm:$0xff] %v326_v27  ;;  %v542_v28 = vpop.f32.mrb[1].mxu0 }
 0x16d   : > { %712 = shalt.err (!%p709_p2)
}
 0x16e   : > { %s713_s4 = scalar_lea.hbm %s1011_s3, 128  ;;  %s717_s26 = scalar_lea.hbm %s1060_s2, 256 }
 0x16f   : > { %p714_p9 = scmp.ne.s32.totalorder %s1011_s3, %s713_s4  ;;  %p718_p6 = scmp.lt.u32.totalorder %s1011_s3, %s1060_s2 }
 0x170   : > { %p719_p4 = scmp.lt.u32.totalorder %s717_s26, %s713_s4  ;;  %p721_p0 = scmp.lt.u32.totalorder %s713_s4, %s1011_s3 }
 0x171   : > { %p715_p11 = pnand %p714_p9, %p1072_p5 }
 0x172   : > { %p720_p8 = por %p719_p4, %p718_p6 }
 0x173   : > { %p716_p3 = pneg %p715_p11 }
 0x174   : > { %p722_p7 = por %p721_p0, %p720_p8 }
 0x176   : > { %p723_p13 = pnand %p722_p7, %p716_p3 }
 0x178   : > { %726 = shalt.err (!%p723_p13)
}
 0x179   : > { %571 = dma.vmem_to_hbm [thread:$0]  (%p1072_p5), %s1006_s16, 128, %s1011_s3, %s343_s7  }
 0x17a PF: > { %s370_s5 = sand.u32 1, %s765_s9   ;;  %p1073_p10 = scmp.ne.s32.totalorder %s1066_s24, 0 }
 0x17b   : > { %p1074_p12 = scmp.ge.s32.totalorder %s785_s14, 2  ;;  %s371_s29 = scalar_lea.sflag [#allocation4], %s370_s5 }
 0x17d   : > { %p581_p1 = pnand %p1074_p12, %p1073_p10 }
 0x17f   : > { %760 = dma.done.wait (!%p581_p1), %s371_s29, 128  }
 0x180   : > { %762 = vsyncadd (!%p581_p1), %s371_s29, 4294967168  ;;  %s21_s14 = sadd.s32 1, %s785_s14   ;;  %s1075_s9 = smov %s769_s10 }
 0x181   : > { %p18_p2 = scmp.ge.s32.totalorder %s21_s14, 4   ;;  %s1076_s10 = smov %s773_s11 }
 0x182   : > { %s1077_s11 = smov %s866_s23  ;;  %s1078_s12 = smov %s781_s13 }
 0x183   : > { %s1079_s13 = smov %s1081_s17  ;;  %20 = sbr.rel (!%p18_p2) target bundleno = 8 (0x8), region = 94 }
 0x18a   :  { %376 = vsyncpa [#allocation3], 1 }
 0x18b   :  { %378 = vsyncpa [#allocation3 + $0x1], 1 }
 0x18c   :  { %379 = vsyncpa [#allocation6], 1 }
 0x18d   :  { %381 = vsyncpa [#allocation6 + $0x1], 1 }
 0x18e   :  { %382 = vsyncpa [#allocation4], 1 }
 0x18f   :  { %384 = vsyncpa [#allocation4 + $0x1], 1 }

</bundles_post_ra>
